<compile_context>
chip_gen: v7x
topology: tpu7x:2x2x1
jax: 0.10.0
libtpu: 0.0.40
codegen_flags: <defaults>
</compile_context>

<pallas_src>
import functools

import jax
import jax.numpy as jnp
from jax.experimental import pallas as pl
from jax.experimental.pallas import tpu as pltpu


def _round_up(a, m):
    return ((a + m - 1) // m) * m


def _vmem_capacity_bytes(default=64 * 1024 * 1024):
    """Physical VMEM per core; falls back to the v7x-safe 64 MiB."""
    try:
        info = pltpu.get_tpu_info()
        cap = getattr(info, "vmem_capacity_bytes", None)
        if cap:
            return int(cap)
    except Exception:
        pass
    return default


def _patch_embed_kernel(x_ref, w_ref, b_ref, o_ref):
    # x_ref: (tm, K) patch tile; w_ref: (K, Np); b_ref: (1, Np) f32;
    # o_ref: (tm, Np).  f32 MXU accumulate, f32 bias add, cast on store.
    acc = jnp.dot(x_ref[...], w_ref[...], preferred_element_type=jnp.float32)
    o_ref[...] = (acc + b_ref[...]).astype(o_ref.dtype)


def patch_embed_forward(x, weight, bias, patch_size, *,
                        compute_dtype=jnp.bfloat16, out_dtype=None, tm=1024):
    """PatchEmbed forward.

    x:      (B, C, H, W)  NCHW activation.
    weight: (E, C, P, P)  PyTorch Conv2d weight layout.
    bias:   (E,)          Conv2d bias.
    Returns (B, num_patches, E).

    compute_dtype: dtype fed to the MXU (bf16 default; accumulation is f32).
                   Use jnp.float32 for an exact path.
    out_dtype:     output dtype (defaults to x.dtype); pass jnp.bfloat16 when
                   the consumer accepts it to halve output HBM writeback.
    tm:            M-tile rows per grid step (1024 default; auto-shrunk for
                   small M and for VMEM headroom).
    """
    B, C, H, W = x.shape
    E = weight.shape[0]
    P = patch_size
    assert H % P == 0 and W % P == 0
    gh, gw = H // P, W // P
    L = gh * gw
    M = B * L
    K = C * P * P
    out_dtype = x.dtype if out_dtype is None else out_dtype

    # --- patchify: NCHW -> (M, K) in (c, kh, kw) order ---------------------
    # Cast FIRST (halves the transpose's HBM write when compute_dtype is
    # narrower), then a single reshape/transpose/reshape.  No jnp.pad of the
    # activation: K stays natural, M is handled by grid clipping.
    xa = x if compute_dtype is None else x.astype(compute_dtype)
    xp = xa.reshape(B, C, gh, P, gw, P)
    xp = jnp.transpose(xp, (0, 2, 4, 1, 3, 5))
    patches = xp.reshape(M, K)

    # Conv weight (E, C, P, P) -> matmul weight (K, E); bias -> (1, E) f32.
    # Pad only these (tiny) to a lane-dense Np so output stores are unmasked.
    w_mat = jnp.transpose(weight.reshape(E, K), (1, 0))
    if compute_dtype is not None:
        w_mat = w_mat.astype(compute_dtype)
    b_mat = bias.reshape(1, E).astype(jnp.float32)
    Np = _round_up(E, 128)
    if Np != E:
        w_mat = jnp.pad(w_mat, ((0, 0), (0, Np - E)))
        b_mat = jnp.pad(b_mat, ((0, 0), (0, Np - E)))

    # --- M tiling: no padding; ragged last block is clipped on store -------
    tm_eff = max(8, _round_up(min(tm, _round_up(M, 8)), 8))
    if pl.cdiv(M, tm_eff) < 2 and M >= 2048:
        # Keep both v7x TensorCores busy when there is enough work to split.
        tm_eff = _round_up(pl.cdiv(M, 2), 8)

    in_bytes = jnp.dtype(patches.dtype).itemsize
    w_bytes = jnp.dtype(w_mat.dtype).itemsize
    out_bytes = jnp.dtype(out_dtype).itemsize

    def _vmem_est(t):
        return (2 * t * K * in_bytes        # patches tile (double buffered)
                + 2 * K * Np * w_bytes      # resident weight (double buffered)
                + 2 * Np * 4                # resident bias
                + 2 * t * Np * out_bytes)   # output tile (double buffered)

    phys = _vmem_capacity_bytes()
    while tm_eff > 256 and _vmem_est(tm_eff) > 0.6 * phys:
        tm_eff = max(256, _round_up(tm_eff // 2, 8))
    vmem_limit = int(min(max(2 * _vmem_est(tm_eff), 32 * 1024 * 1024),
                         int(0.75 * phys)))

    grid = (pl.cdiv(M, tm_eff),)
    cost = pl.CostEstimate(
        flops=2 * M * K * Np,
        transcendentals=0,
        bytes_accessed=(M * K * in_bytes + K * Np * w_bytes + Np * 4
                        + M * Np * out_bytes))

    out = pl.pallas_call(
        _patch_embed_kernel,
        out_shape=jax.ShapeDtypeStruct((M, Np), out_dtype),
        grid_spec=pltpu.PrefetchScalarGridSpec(
            num_scalar_prefetch=0,
            grid=grid,
            in_specs=[
                pl.BlockSpec((tm_eff, K), lambda i: (i, 0)),
                # TODO(synk): pipeline_mode=pl.Buffered(1) on the constant
                # weight/bias specs would free ~K*Np*itemsize of VMEM; left
                # off until verified on the target jax version.
                pl.BlockSpec((K, Np), lambda i: (0, 0)),    # weight: resident
                pl.BlockSpec((1, Np), lambda i: (0, 0)),    # bias: resident
            ],
            out_specs=pl.BlockSpec((tm_eff, Np), lambda i: (i, 0)),
        ),
        compiler_params=pltpu.CompilerParams(
            dimension_semantics=("parallel",),   # shard M tiles across TCs
            vmem_limit_bytes=vmem_limit,
            allow_input_fusion=[True, False, False],
        ),
        cost_estimate=cost,
    )(patches, w_mat, b_mat)

    # --- strip N padding (if any), reshape; norm is Identity ---------------
    if Np != E:
        out = out[:, :E]
    return out.reshape(B, L, E)


def _reference(x, weight, bias, patch_size, compute_dtype=None,
               out_dtype=None):
    """Pure-JAX reference: strided conv == patch matmul."""
    B, C, H, W = x.shape
    E = weight.shape[0]
    P = patch_size
    gh, gw = H // P, W // P
    xp = x.reshape(B, C, gh, P, gw, P)
    xp = jnp.transpose(xp, (0, 2, 4, 1, 3, 5)).reshape(B, gh * gw, C * P * P)
    w_mat = weight.reshape(E, C * P * P)
    if compute_dtype is not None:
        xp = xp.astype(compute_dtype)
        w_mat = w_mat.astype(compute_dtype)
    out = jnp.einsum("blk,ek->ble", xp, w_mat,
                     preferred_element_type=jnp.float32)
    out_dtype = x.dtype if out_dtype is None else out_dtype
    return (out + bias[None, None, :].astype(jnp.float32)).astype(out_dtype)


if __name__ == "__main__":
    # Small shapes consistent with the module: img_size=16, patch_size=4,
    # in_chans=4, embed_dim=32, batch=2 -> num_patches = 16.
    B, C, H, W = 2, 4, 16, 16
    P = 4
    E = 32
    L = (H // P) * (W // P)

    key = jax.random.PRNGKey(0)
    kx, kw, kb = jax.random.split(key, 3)
    x = jax.random.normal(kx, (B, C, H, W), dtype=jnp.float32)
    weight = jax.random.normal(kw, (E, C, P, P), dtype=jnp.float32) * 0.02
    bias = jax.random.normal(kb, (E,), dtype=jnp.float32) * 0.02

    # Exact f32 compute path: tight tolerance vs reference.
    fwd_f32 = jax.jit(functools.partial(patch_embed_forward, patch_size=P,
                                        compute_dtype=jnp.float32))
    out_f32 = jax.block_until_ready(fwd_f32(x, weight, bias))
    ref_f32 = _reference(x, weight, bias, P)
    assert out_f32.shape == (B, L, E), out_f32.shape
    assert jnp.allclose(out_f32, ref_f32, atol=1e-4, rtol=1e-4), \
        "f32 path mismatch vs reference"

    # Default bf16 MXU-feed path: compare vs bf16-input baseline.
    fwd_bf16 = jax.jit(functools.partial(patch_embed_forward, patch_size=P))
    out_bf16 = jax.block_until_ready(fwd_bf16(x, weight, bias))
    ref_bf16 = _reference(x, weight, bias, P, compute_dtype=jnp.bfloat16)
    assert out_bf16.shape == (B, L, E), out_bf16.shape
    assert jnp.allclose(out_bf16, ref_bf16, atol=2e-2, rtol=2e-2), \
        "bf16 path mismatch vs bf16 baseline"
    assert jnp.allclose(out_bf16, ref_f32, atol=5e-2, rtol=5e-2), \
        "bf16 path too far from f32 reference"

    # Ragged-M path (no M padding; last block clipped on store): B=3 -> M=48
    # with tm=32 gives a 2-step grid whose final block has only 16 live rows.
    B3 = 3
    x3 = jax.random.normal(jax.random.PRNGKey(1), (B3, C, H, W),
                           dtype=jnp.float32)
    fwd_ragged = jax.jit(functools.partial(patch_embed_forward, patch_size=P,
                                           compute_dtype=jnp.float32, tm=32))
    out_r = jax.block_until_ready(fwd_ragged(x3, weight, bias))
    ref_r = _reference(x3, weight, bias, P)
    assert out_r.shape == (B3, L, E), out_r.shape
    assert jnp.allclose(out_r, ref_r, atol=1e-4, rtol=1e-4), \
        "ragged-M path mismatch vs reference"

    print("KERNEL_OK")
</pallas_src>

<mosaic_0001>
module attributes {stable_mosaic.version = 11 : i64} {
  func.func @_patch_embed_kernel(%arg0: i32, %arg1: memref<32x64xf32, #tpu.memory_space<vmem>>, %arg2: memref<64x128xf32, #tpu.memory_space<vmem>>, %arg3: memref<1x128xf32, #tpu.memory_space<vmem>>, %arg4: memref<32x128xf32, #tpu.memory_space<vmem>>) attributes {dimension_semantics = [#tpu.dimension_semantics<parallel>], iteration_bounds = array<i64: 1>, scalar_prefetch = 0 : i64, scratch_operands = 0 : i64, tpu.core_type = #tpu.core_type<tc>, window_params = [{transform_indices = @transform_0, window_bounds = array<i64: 32, 64>}, {pipeline_mode = #tpu.pipeline_mode<synchronous>, transform_indices = @transform_1, window_bounds = array<i64: 64, 128>}, {pipeline_mode = #tpu.pipeline_mode<synchronous>, transform_indices = @transform_2, window_bounds = array<i64: 1, 128>}, {transform_indices = @transform_3, window_bounds = array<i64: 32, 128>}]} {
    %c0 = arith.constant 0 : index
    %c0_0 = arith.constant 0 : index
    %0 = vector.load %arg1[%c0, %c0_0] : memref<32x64xf32, #tpu.memory_space<vmem>>, vector<32x64xf32>
    %c0_1 = arith.constant 0 : index
    %c0_2 = arith.constant 0 : index
    %1 = vector.load %arg2[%c0_1, %c0_2] : memref<64x128xf32, #tpu.memory_space<vmem>>, vector<64x128xf32>
    %cst = arith.constant dense<0.000000e+00> : vector<32x128xf32>
    %2 = tpu.matmul %0, %1, %cst {dimension_numbers = #tpu.dot_dimension_numbers<[1], [0], [0], [1], [0, 0, 1, 1], [], []>} : vector<32x64xf32>, vector<64x128xf32>, vector<32x128xf32> -> vector<32x128xf32>
    %c0_3 = arith.constant 0 : index
    %c0_4 = arith.constant 0 : index
    %3 = vector.load %arg3[%c0_3, %c0_4] : memref<1x128xf32, #tpu.memory_space<vmem>>, vector<1x128xf32>
    %4 = vector.broadcast %3 : vector<1x128xf32> to vector<32x128xf32>
    %5 = arith.addf %2, %4 : vector<32x128xf32>
    %c0_5 = arith.constant 0 : index
    %c0_6 = arith.constant 0 : index
    %6 = vector.load %arg4[%c0_5, %c0_6] : memref<32x128xf32, #tpu.memory_space<vmem>>, vector<32x128xf32>
    tpu.vector_store %arg4[%c0_5, %c0_6], %5 {strides = array<i32>} : memref<32x128xf32, #tpu.memory_space<vmem>>, vector<32x128xf32>,
    return
  }
  func.func @transform_0(%arg0: i32) -> (i32, i32) {
    %c0_i32 = arith.constant 0 : i32
    %c0_i32_0 = arith.constant 0 : i32
    return %arg0, %c0_i32 : i32, i32
  }
  func.func @transform_1(%arg0: i32) -> (i32, i32) {
    %c0_i32 = arith.constant 0 : i32
    %c0_i32_0 = arith.constant 0 : i32
    %c0_i32_1 = arith.constant 0 : i32
    return %c0_i32, %c0_i32_0 : i32, i32
  }
  func.func @transform_2(%arg0: i32) -> (i32, i32) {
    %c0_i32 = arith.constant 0 : i32
    %c0_i32_0 = arith.constant 0 : i32
    %c0_i32_1 = arith.constant 0 : i32
    return %c0_i32, %c0_i32_0 : i32, i32
  }
  func.func @transform_3(%arg0: i32) -> (i32, i32) {
    %c0_i32 = arith.constant 0 : i32
    %c0_i32_0 = arith.constant 0 : i32
    return %arg0, %c0_i32 : i32, i32
  }
}

</mosaic_0001>

<bundles_post_ra>
// kernel: patch_embed_forward.1
= control target key start
LH: loop header
LB: loop body
LE: loop exit
PB: predicated region body
PF: predicated region fallthrough
CT: control target
= control target key end

     0   :  { %vm34_vm0 = vcmask 523264   ;;  %s320_s0 = inlined_call_operand.vmem [shape: f32[32,64], index: 0, kind: input, shape index: {}]   ;;  %s321_s1 = inlined_call_operand.vmem [shape: f32[64,128], index: 1, kind: input, shape index: {}]   ;;  %s322_s2 = inlined_call_operand.vmem [shape: f32[1,128], index: 2, kind: input, shape index: {}]   ;;  %s323_s3 = inlined_call_operand.hbm [shape: f32[32,128], index: 3, kind: output, shape index: {}]  }
   0x1   :  { %v19_v0 = vld [vmem:[%s321_s1] sm:$0xff]  ;;  %v20_v1 = vld [vmem:[%s321_s1 + $0x8] sm:$0xff]  ;;  %v21_v2 = vld [vmem:[%s321_s1 + $0x10] sm:$0xff] }
   0x2   :  { %v191_v3 = vpack.c.bf16 %v20_v1, %v19_v0  ;;  %v22_v4 = vld [vmem:[%s321_s1 + $0x18] sm:$0xff]  ;;  %v23_v6 = vld [vmem:[%s321_s1 + $0x20] sm:$0xff]  ;;  %v24_v7 = vld [vmem:[%s321_s1 + $0x28] sm:$0xff] }
   0x3   :  { %v195_v5 = vpack.c.bf16 %v22_v4, %v21_v2  ;;  %v15_v8 = vld [vmem:[%s320_s0] sm:$0xff]  ;;  %v17_v9 = vld [vmem:[%s320_s0 + $0x10] sm:$0xff] }
   0x4   :  { %192 = vmatprep.subr.bf16.mxu0 %v191_v3  ;;  %207 = vmatprep.subr.bf16.mxu1 %v191_v3 }
   0x5   :  { %194 = vmatpush3.bf16.msra.mxu0 %v191_v3  ;;  %211 = vmatpush3.bf16.msra.mxu1 %v191_v3 }
   0x6   :  { %8 = vsyncpa [#allocation3], 0  ;;  %196 = vmatprep.subr.bf16.mxu0 %v195_v5  ;;  %208 = vmatprep.subr.bf16.mxu1 %v195_v5  ;;  %v199_v10 = vpack.c.bf16 %v24_v7, %v23_v6  ;;  %v25_v11 = vld [vmem:[%s321_s1 + $0x30] sm:$0xff]  ;;  %v26_v12 = vld [vmem:[%s321_s1 + $0x38] sm:$0xff]  ;;  %s242_s10 = smov [#allocation2]  }
   0x7   :  { %185 = vmatprep.mubr.msk.f32.mxu0 %vm34_vm0, %v15_v8  ;;  %188 = vmatprep.mubr.msk.f32.mxu1 %vm34_vm0, %v17_v9  ;;  %v203_v13 = vpack.c.bf16 %v26_v12, %v25_v11  ;;  %v16_v14 = vld [vmem:[%s320_s0 + $0x8] sm:$0xff]  ;;  %v18_v15 = vld [vmem:[%s320_s0 + $0x18] sm:$0xff]  ;;  %v152_v16 = vld [vmem:[%s322_s2] ss:$0 sm:$0xff]  ;;  %s141_s11 = sshll.u32 %s242_s10, 4  ;;  %s142_s11 = int_to_ptr.vmem [resolvable:$true] %s141_s11 }
   0x8   :  { %s218_s0 = scalar_lea.vmem %s142_s11, 512  ;;  %p223_p1 = scmp.lt.s32.totalorder %s142_s11, %s142_s11 }
   0x9   :  { %198 = vmatpush3.bf16.msra.mxu0 %v195_v5  ;;  %212 = vmatpush3.bf16.msra.mxu1 %v195_v5  ;;  %p219_p0 = scmp.ne.s32.totalorder %s142_s11, %s218_s0  ;;  %p224_p2 = scmp.lt.s32.totalorder %s218_s0, %s218_s0 }
   0xa   :  { %200 = vmatprep.subr.bf16.mxu0 %v199_v10  ;;  %209 = vmatprep.subr.bf16.mxu1 %v199_v10 }
   0xb   :  { %p225_p3 = por %p224_p2, %p223_p1 }
   0xd   :  { %202 = vmatpush3.bf16.msra.mxu0 %v199_v10  ;;  %213 = vmatpush3.bf16.msra.mxu1 %v199_v10  ;;  %p226_p4 = pnand %p225_p3, %p219_p0 }
   0xe   :  { %204 = vmatprep.subr.bf16.mxu0 %v203_v13  ;;  %210 = vmatprep.subr.bf16.mxu1 %v203_v13 }
  0x11   :  { %206 = vmatpush3.bf16.msra.mxu0 %v203_v13  ;;  %214 = vmatpush3.bf16.msra.mxu1 %v203_v13 }
  0x14   :  { %186 = vmatmul.mubr.msk.f32.vlgmr.msra.gmra.mrb[0].mxu0 %vm34_vm0, %v16_v14  ;;  %189 = vmatmul.mubr.msk.f32.vlgmr.msra.gmra.mrb[0].mxu1 %vm34_vm0, %v18_v15 }
  0xe7   :  { %v187_v17 = vpop.f32.mrb[0].mxu0  ;;  %v190_v18 = vpop.f32.mrb[0].mxu1 }
  0xe8   :  { %v119_v19 = vadd.f32 %v187_v17, %v152_v16  ;;  %v129_v20 = vadd.f32 %v190_v18, %v152_v16  ;;  %v113_v21 = vpop.f32.mrb[1].mxu0  ;;  %v123_v22 = vpop.f32.mrb[1].mxu1 }
  0xe9   :  { %v114_v23 = vadd.f32 %v152_v16, %v113_v21  ;;  %v124_v24 = vadd.f32 %v152_v16, %v123_v22 }
  0xea   :  { %133 = vst [vmem:[#allocation2 + $0x8] sm:$0xff] %v119_v19  ;;  %135 = vst [vmem:[#allocation2 + $0x18] sm:$0xff] %v129_v20 }
  0xeb   :  { %132 = vst [vmem:[#allocation2] sm:$0xff] %v114_v23  ;;  %134 = vst [vmem:[#allocation2 + $0x10] sm:$0xff] %v124_v24 }
  0xec   :  { %229 = shalt.err (!%p226_p4)
}
  0xed   :  { %s230_s13 = scalar_lea.hbm %s323_s3, 512 }
  0xee   :  { %p231_p5 = scmp.ne.s32.totalorder %s323_s3, %s230_s13  ;;  %p234_p6 = scmp.lt.u32.totalorder %s230_s13, %s323_s3 }
  0xf0   :  { %p236_p7 = pnand %p234_p6, %p231_p5 }
  0xf2   :  { %239 = shalt.err (!%p236_p7)
}
  0xf3   :  { %s243_s18 = smov 128   ;;  %s244_s19 = smov 8  }
  0xf4   :  { %147 = dma.vmem_to_hbm [thread:$0]  %s142_s11, 512, %s323_s3, [#allocation3], %s243_s18, %s243_s18, %s244_s19  }
  0xf5   :  { %240 = dma.done.wait [#allocation3], 512  }
  0xf6   :  { %241 = vsyncadd [#allocation3], 4294966784 }
  0xf7   :  { %151 = vsyncpa [#allocation3], 1 }

</bundles_post_ra>
